<compile_context>
chip_gen: v5e
topology: v5e:2x2
jax: 0.10.0
libtpu: 0.0.40
codegen_flags: <defaults>
</compile_context>

<pallas_src>
import functools

import jax
import jax.numpy as jnp
from jax import lax
from jax.experimental import pallas as pl
from jax.experimental.pallas import tpu as pltpu

INPUT_NC = 8       # input_nc defaults to outer_nc in the PyTorch module
OUTER_NC = 8
INNER_NC = 32
LATENT = 8
H = W = 2
HW = H * W
EPS = 1e-5         # nn.BatchNorm2d default eps

XF = INPUT_NC * HW           # flattened input width (skip path / conv input)
UP = OUTER_NC * HW           # flattened upconv output width (channel-major)
PACK_COLS = max(INNER_NC, UP)

# row offsets inside the packed weight matrix (all multiples of 8)
R_W1 = 0
R_W2 = R_W1 + XF             # fused downconv∘Linear rows
R_WU = R_W2 + LATENT         # Linear latent-path rows
R_WUM = R_WU + INNER_NC      # upconv rows
R_M = R_WUM + INNER_NC       # (upconv @ M) rows
R_END = R_M + UP             # per-channel averaging matrix rows


def _lf_unet_kernel(x_ref, lat_ref, w_ref, v_ref, out_ref):
    x = x_ref[...]                          # (Bt, XF)  NCHW-flat input (skip path)
    lat = lat_ref[...]                      # (Bt, LATENT)
    w = w_ref[...]                          # (R_END, PACK_COLS) packed weights
    v = v_ref[...]                          # (3, PACK_COLS) packed bias / BN params

    w1 = w[R_W1:R_W2, :INNER_NC]            # fused downconv∘Linear (input path)
    w2 = w[R_W2:R_WU, :INNER_NC]            # Linear (latent path)
    wup = w[R_WU:R_WUM, :UP]                # upconv 1x1->2x2, channel-major cols
    wupm = w[R_WUM:R_M, :UP]                # wup @ M (per-channel means of `up`)
    m = w[R_M:R_END, :UP]                   # per-channel averaging matrix
    bfc = v[0:1, :INNER_NC]
    gamma = v[1:2, :UP]
    beta = v[2:3, :UP]

    # downrelu (LeakyReLU 0.2) -> [downconv ∘ FC Linear] fused into one pair of dots
    xa = jnp.where(x > 0, x, 0.2 * x)
    fc = (jnp.dot(xa, w1, preferred_element_type=jnp.float32)
          + jnp.dot(lat, w2, preferred_element_type=jnp.float32) + bfc)

    # FC LeakyReLU(0.2) followed by uprelu == plain ReLU (algebraically exact)
    r = jnp.maximum(fc, 0.0)

    # upconv (ConvTranspose2d k4/s2/p1, 1x1 -> 2x2) as one matmul; BN batch
    # statistics (per channel over the 4 spatial positions) via matmuls with M.
    up = jnp.dot(r, wup, preferred_element_type=jnp.float32)       # (Bt, UP)
    mean = jnp.dot(r, wupm, preferred_element_type=jnp.float32)    # broadcast means
    diff = up - mean
    var = jnp.dot(diff * diff, m, preferred_element_type=jnp.float32)
    bn = diff * lax.rsqrt(var + EPS) * gamma + beta

    # outer skip connection: y_0 = cat((x, y), dim=1) in NCHW == lane concat here
    out_ref[...] = jnp.concatenate([x, bn], axis=1)                # (Bt, XF + UP)


def prepare_params(params):
    """One-time static repacking of the module parameters (hoisted off the forward path)."""
    wd = params["w_down"]                                   # (inner, c_in, 4, 4)
    inner_nc, c_in = wd.shape[0], wd.shape[1]
    assert (inner_nc, c_in) == (INNER_NC, INPUT_NC)

    # Conv2d k4/s2/p1 on a 2x2 image -> single output pixel: only the central
    # 2x2 kernel taps touch data.  Rows ordered c*HW + h*W + w (NCHW flatten).
    wd_mat = wd[:, :, 1:3, 1:3].transpose(1, 2, 3, 0).reshape(c_in * HW, inner_nc)

    wfc = params["w_fc"]                                    # (inner, inner + L)
    wc = wfc[:, :inner_nc].T                                # (inner, inner)
    w2 = wfc[:, inner_nc:].T                                # (L, inner)
    w1 = wd_mat @ wc                                        # fused downconv∘Linear

    wt = params["w_up"]                                     # (inner, outer, 4, 4)
    outer_nc = wt.shape[1]
    assert outer_nc == OUTER_NC
    # ConvTranspose2d k4/s2/p1 on 1x1 -> 2x2 also only touches the central taps.
    # Columns ordered o*HW + h*W + w (channel-major == NCHW flatten of output).
    wup = wt[:, :, 1:3, 1:3].reshape(inner_nc, outer_nc * HW)

    # per-channel averaging matrix (broadcast channel mean over its HW lanes)
    m = jnp.kron(jnp.eye(outer_nc, dtype=jnp.float32),
                 jnp.full((HW, HW), 1.0 / HW, jnp.float32))
    wupm = wup @ m

    def padc(a):
        return jnp.pad(a.astype(jnp.float32), ((0, 0), (0, PACK_COLS - a.shape[1])))

    w_pack = jnp.concatenate(
        [padc(w1), padc(w2), padc(wup), padc(wupm), padc(m)], axis=0)
    assert w_pack.shape == (R_END, PACK_COLS)

    gamma_e = jnp.repeat(params["gamma"], HW)               # per-lane BN scale
    beta_e = jnp.repeat(params["beta"], HW)                 # per-lane BN shift
    v_pack = jnp.zeros((3, PACK_COLS), jnp.float32)
    v_pack = v_pack.at[0, :INNER_NC].set(params["b_fc"])
    v_pack = v_pack.at[1, :UP].set(gamma_e)
    v_pack = v_pack.at[2, :UP].set(beta_e)
    return {"w_pack": w_pack, "v_pack": v_pack}


@jax.jit
def lf_unet_skip_block(x_img, latent, packed):
    """Module-faithful forward (B=1). Returns (y_0, latent)."""
    b, c_in, h, w = x_img.shape
    assert (b, c_in, h, w) == (1, INPUT_NC, H, W), \
        "FC submodule's view((1, inner_nc)) forces B=1 and a 2x2 input"
    x_flat = x_img.reshape(1, XF)                           # free contiguous view
    vmem = pl.BlockSpec(memory_space=pltpu.MemorySpace.VMEM)
    out = pl.pallas_call(
        _lf_unet_kernel,
        out_shape=jax.ShapeDtypeStruct((1, XF + UP), jnp.float32),
        in_specs=[vmem] * 4,
        out_specs=vmem,
    )(x_flat, latent, packed["w_pack"], packed["v_pack"])
    y0 = out.reshape(1, INPUT_NC + OUTER_NC, H, W)          # free contiguous view
    return y0, latent


@functools.partial(jax.jit, static_argnames=("b_tile",))
def lf_unet_skip_block_batched(x_imgs, latents, packed, *, b_tile=32):
    """B independent per-sample forwards fused in one pallas_call (identical math)."""
    bsz, c_in, h, w = x_imgs.shape
    assert (c_in, h, w) == (INPUT_NC, H, W)
    assert bsz % b_tile == 0 and b_tile % 8 == 0
    x_flat = x_imgs.reshape(bsz, XF)                        # free contiguous view
    out = pl.pallas_call(
        _lf_unet_kernel,
        out_shape=jax.ShapeDtypeStruct((bsz, XF + UP), jnp.float32),
        grid=(bsz // b_tile,),
        in_specs=[
            pl.BlockSpec((b_tile, XF), lambda i: (i, 0)),
            pl.BlockSpec((b_tile, LATENT), lambda i: (i, 0)),
            pl.BlockSpec((R_END, PACK_COLS), lambda i: (0, 0)),   # weights stay resident
            pl.BlockSpec((3, PACK_COLS), lambda i: (0, 0)),
        ],
        out_specs=pl.BlockSpec((b_tile, XF + UP), lambda i: (i, 0)),
        compiler_params=pltpu.CompilerParams(dimension_semantics=("parallel",)),
    )(x_flat, latents, packed["w_pack"], packed["v_pack"])
    y0 = out.reshape(bsz, INPUT_NC + OUTER_NC, H, W)
    return y0, latents


def reference(x_img, latent, params):
    """Pure-JAX replica of the PyTorch forward (for validation)."""
    xa = jnp.where(x_img > 0, x_img, 0.2 * x_img)
    conv = lax.conv_general_dilated(
        xa, params["w_down"], window_strides=(2, 2), padding=((1, 1), (1, 1)),
        dimension_numbers=("NCHW", "OIHW", "NCHW"))          # (1, inner, 1, 1)
    z = jnp.concatenate([conv.reshape(1, -1), latent], axis=1)
    fc = z @ params["w_fc"].T + params["b_fc"]
    fc = jnp.where(fc > 0, fc, 0.2 * fc)
    r = jnp.maximum(fc, 0.0)
    up = jnp.einsum("c,coyx->oyx", r[0], params["w_up"][:, :, 1:3, 1:3])[None]
    mean = up.mean(axis=(0, 2, 3), keepdims=True)
    var = ((up - mean) ** 2).mean(axis=(0, 2, 3), keepdims=True)
    bn = ((up - mean) / jnp.sqrt(var + EPS)
          * params["gamma"].reshape(1, -1, 1, 1)
          + params["beta"].reshape(1, -1, 1, 1))
    return jnp.concatenate([x_img, bn], axis=1), latent


if __name__ == "__main__":
    key = jax.random.PRNGKey(0)
    ks = jax.random.split(key, 10)
    params = {
        "w_down": 0.1 * jax.random.normal(ks[0], (INNER_NC, INPUT_NC, 4, 4), jnp.float32),
        "w_fc":   0.1 * jax.random.normal(ks[1], (INNER_NC, INNER_NC + LATENT), jnp.float32),
        "b_fc":   0.1 * jax.random.normal(ks[2], (INNER_NC,), jnp.float32),
        "w_up":   0.1 * jax.random.normal(ks[3], (INNER_NC, OUTER_NC, 4, 4), jnp.float32),
        "gamma":  1.0 + 0.1 * jax.random.normal(ks[4], (OUTER_NC,), jnp.float32),
        "beta":   0.1 * jax.random.normal(ks[5], (OUTER_NC,), jnp.float32),
    }
    packed = prepare_params(params)                     # static: computed once

    # --- module-faithful single-sample forward ---
    x_img = jax.random.normal(ks[6], (1, INPUT_NC, H, W), jnp.float32)
    latent = jax.random.normal(ks[7], (1, LATENT), jnp.float32)
    y0, lat_out = lf_unet_skip_block(x_img, latent, packed)
    jax.block_until_ready(y0)

    y0_ref, _ = reference(x_img, latent, params)
    assert y0.shape == (1, INPUT_NC + OUTER_NC, H, W)
    assert jnp.allclose(y0, y0_ref, atol=1e-4, rtol=1e-4), "single-sample mismatch"
    assert jnp.allclose(lat_out, latent)

    # --- batched forward: many independent samples in one pallas_call ---
    B = 64
    xb = jax.random.normal(ks[8], (B, INPUT_NC, H, W), jnp.float32)
    lb = jax.random.normal(ks[9], (B, LATENT), jnp.float32)
    yb, _ = lf_unet_skip_block_batched(xb, lb, packed, b_tile=32)
    jax.block_until_ready(yb)

    yb_ref = jax.vmap(lambda xi, li: reference(xi[None], li[None], params)[0][0])(xb, lb)
    assert yb.shape == (B, INPUT_NC + OUTER_NC, H, W)
    assert jnp.allclose(yb, yb_ref, atol=1e-4, rtol=1e-4), "batched mismatch"

    print("KERNEL_OK")
</pallas_src>

<mosaic_0001>
module attributes {stable_mosaic.version = 11 : i64} {
  func.func @_lf_unet_kernel(%arg0: memref<1x32xf32, #tpu.memory_space<vmem>>, %arg1: memref<1x8xf32, #tpu.memory_space<vmem>>, %arg2: memref<136x32xf32, #tpu.memory_space<vmem>>, %arg3: memref<3x32xf32, #tpu.memory_space<vmem>>, %arg4: memref<1x64xf32, #tpu.memory_space<vmem>>) attributes {dimension_semantics = [], scalar_prefetch = 0 : i64, scratch_operands = 0 : i64, tpu.core_type = #tpu.core_type<tc>} {
    %c0 = arith.constant 0 : index
    %c0_0 = arith.constant 0 : index
    %0 = vector.load %arg0[%c0, %c0_0] : memref<1x32xf32, #tpu.memory_space<vmem>>, vector<1x32xf32>
    %c0_1 = arith.constant 0 : index
    %c0_2 = arith.constant 0 : index
    %1 = vector.load %arg1[%c0_1, %c0_2] : memref<1x8xf32, #tpu.memory_space<vmem>>, vector<1x8xf32>
    %c0_3 = arith.constant 0 : index
    %c0_4 = arith.constant 0 : index
    %2 = vector.load %arg2[%c0_3, %c0_4] : memref<136x32xf32, #tpu.memory_space<vmem>>, vector<136x32xf32>
    %c0_5 = arith.constant 0 : index
    %c0_6 = arith.constant 0 : index
    %3 = vector.load %arg3[%c0_5, %c0_6] : memref<3x32xf32, #tpu.memory_space<vmem>>, vector<3x32xf32>
    %4 = vector.extract_strided_slice %2 {offsets = [0, 0], sizes = [32, 32], strides = [1, 1]} : vector<136x32xf32> to vector<32x32xf32>
    %5 = vector.extract_strided_slice %2 {offsets = [32, 0], sizes = [8, 32], strides = [1, 1]} : vector<136x32xf32> to vector<8x32xf32>
    %6 = vector.extract_strided_slice %2 {offsets = [40, 0], sizes = [32, 32], strides = [1, 1]} : vector<136x32xf32> to vector<32x32xf32>
    %7 = vector.extract_strided_slice %2 {offsets = [72, 0], sizes = [32, 32], strides = [1, 1]} : vector<136x32xf32> to vector<32x32xf32>
    %8 = vector.extract_strided_slice %2 {offsets = [104, 0], sizes = [32, 32], strides = [1, 1]} : vector<136x32xf32> to vector<32x32xf32>
    %9 = vector.extract_strided_slice %3 {offsets = [0, 0], sizes = [1, 32], strides = [1, 1]} : vector<3x32xf32> to vector<1x32xf32>
    %10 = vector.extract_strided_slice %3 {offsets = [1, 0], sizes = [1, 32], strides = [1, 1]} : vector<3x32xf32> to vector<1x32xf32>
    %11 = vector.extract_strided_slice %3 {offsets = [2, 0], sizes = [1, 32], strides = [1, 1]} : vector<3x32xf32> to vector<1x32xf32>
    %cst = arith.constant 0.000000e+00 : f32
    %12 = vector.broadcast %cst : f32 to vector<1x32xf32>
    %13 = arith.cmpf ogt, %0, %12 : vector<1x32xf32>
    %cst_7 = arith.constant 2.000000e-01 : f32
    %14 = vector.broadcast %cst_7 : f32 to vector<1x32xf32>
    %15 = arith.mulf %14, %0 : vector<1x32xf32>
    %16 = arith.select %13, %0, %15 : vector<1x32xi1>, vector<1x32xf32>
    %cst_8 = arith.constant dense<0.000000e+00> : vector<1x32xf32>
    %17 = tpu.matmul %16, %4, %cst_8 {dimension_numbers = #tpu.dot_dimension_numbers<[1], [0], [0], [1], [0, 0, 1, 1], [], []>} : vector<1x32xf32>, vector<32x32xf32>, vector<1x32xf32> -> vector<1x32xf32>
    %cst_9 = arith.constant dense<0.000000e+00> : vector<1x32xf32>
    %18 = tpu.matmul %1, %5, %cst_9 {dimension_numbers = #tpu.dot_dimension_numbers<[1], [0], [0], [1], [0, 0, 1, 1], [], []>} : vector<1x8xf32>, vector<8x32xf32>, vector<1x32xf32> -> vector<1x32xf32>
    %19 = arith.addf %17, %18 : vector<1x32xf32>
    %20 = arith.addf %19, %9 : vector<1x32xf32>
    %cst_10 = arith.constant 0.000000e+00 : f32
    %21 = vector.broadcast %cst_10 : f32 to vector<1x32xf32>
    %22 = arith.maximumf %20, %21 : vector<1x32xf32>
    %cst_11 = arith.constant dense<0.000000e+00> : vector<1x32xf32>
    %23 = tpu.matmul %22, %6, %cst_11 {dimension_numbers = #tpu.dot_dimension_numbers<[1], [0], [0], [1], [0, 0, 1, 1], [], []>} : vector<1x32xf32>, vector<32x32xf32>, vector<1x32xf32> -> vector<1x32xf32>
    %cst_12 = arith.constant dense<0.000000e+00> : vector<1x32xf32>
    %24 = tpu.matmul %22, %7, %cst_12 {dimension_numbers = #tpu.dot_dimension_numbers<[1], [0], [0], [1], [0, 0, 1, 1], [], []>} : vector<1x32xf32>, vector<32x32xf32>, vector<1x32xf32> -> vector<1x32xf32>
    %25 = arith.subf %23, %24 : vector<1x32xf32>
    %26 = arith.mulf %25, %25 : vector<1x32xf32>
    %cst_13 = arith.constant dense<0.000000e+00> : vector<1x32xf32>
    %27 = tpu.matmul %26, %8, %cst_13 {dimension_numbers = #tpu.dot_dimension_numbers<[1], [0], [0], [1], [0, 0, 1, 1], [], []>} : vector<1x32xf32>, vector<32x32xf32>, vector<1x32xf32> -> vector<1x32xf32>
    %cst_14 = arith.constant 9.99999974E-6 : f32
    %28 = vector.broadcast %cst_14 : f32 to vector<1x32xf32>
    %29 = arith.addf %27, %28 : vector<1x32xf32>
    %30 = math.rsqrt %29 : vector<1x32xf32>
    %31 = arith.mulf %25, %30 : vector<1x32xf32>
    %32 = arith.mulf %31, %10 : vector<1x32xf32>
    %33 = arith.addf %32, %11 : vector<1x32xf32>
    %34 = tpu.concatenate %0, %33 in 1 : vector<1x32xf32>, vector<1x32xf32> -> vector<1x64xf32>
    %c0_15 = arith.constant 0 : index
    %c0_16 = arith.constant 0 : index
    %35 = vector.load %arg4[%c0_15, %c0_16] : memref<1x64xf32, #tpu.memory_space<vmem>>, vector<1x64xf32>
    tpu.vector_store %arg4[%c0_15, %c0_16], %34 {strides = array<i32>} : memref<1x64xf32, #tpu.memory_space<vmem>>, vector<1x64xf32>,
    return
  }
}

</mosaic_0001>

<bundles_post_ra>
// kernel: lf_unet_skip_block.1
= control target key start
LH: loop header
LB: loop body
LE: loop exit
PB: predicated region body
PF: predicated region fallthrough
CT: control target
= control target key end

     0   :  { %vm40_vm0 = vcmask 64512   ;;  %vm64_vm2 = vcmask 261120   ;;  %vm181_vm6 = vcmask 516096   ;;  %s295_s2 = inlined_call_operand.vmem [shape: f32[136,32], index: 2, kind: input, shape index: {}]   ;;  %s296_s1 = inlined_call_operand.vmem [shape: f32[1,8], index: 1, kind: input, shape index: {}]   ;;  %s297_s0 = inlined_call_operand.vmem [shape: f32[1,32], index: 0, kind: input, shape index: {}]   ;;  %s298_s3 = inlined_call_operand.vmem [shape: f32[3,32], index: 3, kind: input, shape index: {}]   ;;  %s299_s4 = inlined_call_operand.vmem [shape: f32[1,64], index: 4, kind: output, shape index: {}]  }
   0x1   :  { %v22_v0 = vld [vmem:[%s295_s2 + $0x18] sm:$0xff]  ;;  %v21_v1 = vld [vmem:[%s295_s2 + $0x10] sm:$0xff]  ;;  %v23_v2 = vld [vmem:[%s295_s2 + $0x20] sm:$0xff] }
   0x2   :  { %80 = vmatpush.msra.mxu1 %v22_v0  ;;  %v18_v3 = vld [vmem:[%s296_s1] sm:$0x1]  ;;  %v20_v4 = vld [vmem:[%s295_s2 + $0x8] sm:$0xff]  ;;  %59 = vmatpush.msra.mxu0 %v23_v2  ;;  %v26_v11 = vld [vmem:[%s295_s2 + $0x38] sm:$0xff] }
   0x3   :  { %v239_v5 = vld [vmem:[%s297_s0] sm:$0x1]  ;;  %187 = vmatmul.msk.f32.vlgmr.msra.gmra.mxu0 %vm40_vm0, %v18_v3  ;;  %v30_v12 = vld [vmem:[%s295_s2 + $0x58] sm:$0xff]  ;;  %v25_v13 = vld [vmem:[%s295_s2 + $0x30] sm:$0xff] }
   0x4   :  { %81 = vmatpush.msra.mxu1 %v21_v1  ;;  %vm37_vm1 = vcmp.gt.f32.partialorder %v239_v5, 0.0  ;;  %v38_v6 = vmul.f32 0.2, %v239_v5  ;;  %v19_v7 = vld [vmem:[%s295_s2] sm:$0xff]  ;;  %v29_v14 = vld [vmem:[%s295_s2 + $0x50] sm:$0xff]  ;;  %v24_v15 = vld [vmem:[%s295_s2 + $0x28] sm:$0xff] }
   0x5   :  { %v27_v9 = vld [vmem:[%s295_s2 + $0x40] sm:$0xff]  ;;  %v28_v16 = vld [vmem:[%s295_s2 + $0x48] sm:$0xff]  ;;  %v34_v18 = vld [vmem:[%s295_s2 + $0x78] sm:$0xff] }
   0x6   :  { %82 = vmatpush.msra.mxu1 %v20_v4  ;;  %v39_v8 = vsel %vm37_vm1, %v239_v5, %v38_v6  ;;  %v31_v10 = vld [vmem:[%s295_s2 + $0x60] sm:$0xff]  ;;  %105 = vmatpush.msra.mxu2 %v27_v9  ;;  %v33_v25 = vld [vmem:[%s295_s2 + $0x70] sm:$0xff]  ;;  %v32_v26 = vld [vmem:[%s295_s2 + $0x68] sm:$0xff] }
   0x7   :  { %125 = vmatpush.msra.mxu3 %v31_v10  ;;  %v35_v17 = vld [vmem:[%s295_s2 + $0x80] sm:$0xff]  ;;  %s195_s2 = smov 32  }
   0x8   :  { %83 = vmatpush.msra.mxu1 %v19_v7  ;;  %106 = vmatpush.msra.mxu2 %v26_v11  ;;  %v36_v20 = vld [vmem:[%s298_s3] sm:$0x7] }
   0x9   :  { %188 = vmatmul.msk.f32.vlgmr.msra.gmra.mxu1 %vm64_vm2, %v39_v8  ;;  %126 = vmatpush.msra.mxu3 %v30_v12  ;;  %v170_v39 = vrot.slane %v36_v20, 1  ;;  %v173_v42 = vrot.slane %v36_v20, 2 }
   0xa   :  { %107 = vmatpush.msra.mxu2 %v25_v13  ;;  %150 = vmatpush.msrb.mxu0 %v35_v17 }
   0xb   :  { %127 = vmatpush.msra.mxu3 %v29_v14 }
   0xc   :  { %108 = vmatpush.msra.mxu2 %v24_v15  ;;  %151 = vmatpush.msrb.mxu0 %v34_v18 }
   0xd   :  { %128 = vmatpush.msra.mxu3 %v28_v16 }
   0xe   :  { %152 = vmatpush.msrb.mxu0 %v33_v25 }
  0x10   :  { %153 = vmatpush.msrb.mxu0 %v32_v26 }
  0x80   :  { %v61_v19 = vpop.f32.mrf.mxu0 }
  0x86   :  { %v85_v21 = vpop.f32.mrf.mxu1 }
  0x87   :  { %v86_v22 = vadd.f32 %v85_v21, %v61_v19 }
  0x89   :  { %v88_v23 = vadd.f32 %v86_v22, %v36_v20 }
  0x8b   :  { %v89_v24 = vmax.f32 %v88_v23, 0.0 }
  0x8d   :  { %189 = vmatmul.msk.f32.vlgmr.msra.gmra.mxu2 %vm64_vm2, %v89_v24  ;;  %190 = vmatmul.msk.f32.vlgmr.msra.gmra.mxu3 %vm64_vm2, %v89_v24 }
 0x110   :  { %v110_v27 = vpop.f32.mrf.mxu2  ;;  %v130_v28 = vpop.f32.mrf.mxu3 }
 0x111   :  { %v133_v29 = vsub.f32 %v110_v27, %v130_v28 }
 0x113   :  { %v134_v30 = vmul.f32 %v133_v29, %v133_v29 }
 0x115   :  { %191 = vmatmul.msk.f32.vlgmr.msrb.gmra.mxu0 %vm64_vm2, %v134_v30 }
 0x192   :  { %v155_v31 = vpop.f32.mrf.mxu0 }
 0x193   :  { %v156_v32 = vadd.f32 1e-05, %v155_v31 }
 0x195   :  { %193 = vrsqrt.f32 %v156_v32  ;;  %vm164_vm4 = vweird.f32 %v156_v32 }
 0x19b   :  { %v194_v33 = vpop.eup %193 }
 0x19c   :  { %v159_v34 = vmul.f32 %v194_v33, %v156_v32  ;;  %vm165_vm3 = vweird.f32 %v194_v33 }
 0x19d   :  { %vm166_vm5 = vmor %vm164_vm4, %vm165_vm3 }
 0x19e   :  { %v160_v35 = vmul.f32 %v194_v33, %v159_v34 }
 0x1a0   :  { %v161_v36 = vmul.f32 0.5, %v160_v35 }
 0x1a2   :  { %v162_v37 = vsub.f32 1.5, %v161_v36 }
 0x1a4   :  { %v163_v38 = vmul.f32 %v194_v33, %v162_v37 }
 0x1a6   :  { %v167_v40 = vsel %vm166_vm5, %v194_v33, %v163_v38 }
 0x1a7   :  { %v168_v41 = vmul.f32 %v167_v40, %v133_v29 }
 0x1a9   :  { %v172_v43 = vmul.f32 %v170_v39, %v168_v41 }
 0x1ab   :  { %v175_v44 = vadd.f32 %v173_v42, %v172_v43 }
 0x1ad   :  { %177 = vrot.lane.b32.xlu0 %v175_v44, %s195_s2 }
 0x21f   :  { %v178_v45 = vpop.permute.xlu0 %177 }
 0x220   :  { %v180_v46 = vsel %vm64_vm2, %v239_v5, %v178_v45 }
 0x221   :  { %182 = vst.msk [vmem:[%s299_s4] sm:$0x1] %vm181_vm6, %v180_v46 }

</bundles_post_ra>
